<compile_context>
chip_gen: v7x
topology: tpu7x:2x2x1
jax: 0.10.0
libtpu: 0.0.40
codegen_flags: <defaults>
</compile_context>

<pallas_src>
import jax
import jax.numpy as jnp
from jax.experimental import pallas as pl
from jax.experimental.pallas import tpu as pltpu

EPS = 1e-5


def prenorm_linear_kernel(x_ref, gamma_ref, beta_ref, w_ref, b_ref, o_ref, y_ref):
    j = pl.program_id(1)

    # --- LayerNorm: single-pass f32 stats, once per row tile, cached in bf16 ---
    @pl.when(j == 0)
    def _():
        x = x_ref[...].astype(jnp.float32)
        inv_d = 1.0 / x.shape[-1]
        mean = jnp.sum(x, axis=-1, keepdims=True) * inv_d
        ex2 = jnp.sum(x * x, axis=-1, keepdims=True) * inv_d
        var = ex2 - mean * mean
        xhat = (x - mean) * jax.lax.rsqrt(var + EPS)
        y = (xhat * gamma_ref[...].astype(jnp.float32)
             + beta_ref[...].astype(jnp.float32))
        y_ref[...] = y.astype(y_ref.dtype)

    # --- fn: Linear(dim, dim) column tile: bf16 x bf16 -> f32 accumulate on MXU ---
    out = jnp.dot(y_ref[...], w_ref[...], preferred_element_type=jnp.float32)
    out = out + b_ref[...].astype(jnp.float32)
    o_ref[...] = out.astype(o_ref.dtype)


def _round_up(x, m):
    return ((x + m - 1) // m) * m


def _vmem_budget_bytes():
    try:
        cap = int(pltpu.get_tpu_info().vmem_capacity_bytes)
    except Exception:
        cap = None
    if not cap or cap <= 0:
        cap = 64 * 1024 * 1024  # conservative fallback (v7x per-TC VMEM)
    return int(cap * 0.85)      # leave headroom for the compiler


def _plan_tiling(N, D, out_itemsize, budget):
    """Pick (tm, tn) and return the estimated per-step VMEM residency."""
    def residency(tm, tn):
        return (2 * tm * D * 2                    # bf16 x tiles (double-buffered)
                + tm * D * 2                      # bf16 y scratch
                + 2 * D * tn * 2                  # bf16 W tiles (double-buffered)
                + 2 * tm * tn * out_itemsize      # out tiles (double-buffered)
                + 4 * D * 8)                      # gamma / beta / bias (generous)

    # Preferred: W fully VMEM-resident (tn = D) -> W is DMA'd from HBM exactly once.
    for tm_try in (512, 384, 256, 128, 64, 32, 16, 8):
        tm = min(tm_try, _round_up(N, 8))
        need = residency(tm, D)
        if need <= budget:
            return tm, D, need

    # Fallback: column-tile W; raise tm past the W-streaming threshold
    # (~peak_flops / HBM_BW rows) so the re-streamed W hides behind the MXU.
    tn = 512 if D % 512 == 0 else (256 if D % 256 == 0 else 128)
    for tm_try in (1024, 768, 512, 384, 256, 128, 64, 32, 16, 8):
        tm = min(tm_try, _round_up(N, 8))
        need = residency(tm, tn)
        if need <= budget:
            return tm, tn, need

    tm = min(8, _round_up(N, 8))
    return tm, 128, residency(tm, 128)


def prenorm_forward(x, gamma, beta, w, b, *, out_dtype=None,
                    x_compute_dtype=jnp.bfloat16):
    """x: (B, S, D) -> (B, S, D).  Computes Linear(LayerNorm(x)) in one fused kernel."""
    B, S, D = x.shape
    assert D % 128 == 0, "feature dim must be a multiple of 128 (pad in the caller)"
    out_dtype = x.dtype if out_dtype is None else out_dtype
    out_itemsize = jnp.dtype(out_dtype).itemsize

    N = B * S
    budget = _vmem_budget_bytes()
    tm, tn, vmem_need = _plan_tiling(N, D, out_itemsize, budget)

    # v7x megacore: ensure the (parallel) row axis has >= 2 tiles when there are
    # enough rows, so the grid can shard across both TensorCores.
    if pl.cdiv(N, tm) < 2 and N >= 256:
        tm = _round_up(pl.cdiv(N, 2), 8)

    n_row_tiles = pl.cdiv(N, tm)
    n_col_tiles = D // tn
    Np = n_row_tiles * tm

    # Stream activations as bf16 (stats are still computed in f32 inside the kernel).
    x2 = x.reshape(N, D).astype(x_compute_dtype)
    if Np != N:
        # Padded rows produce finite junk that is sliced off below.
        x2 = jnp.pad(x2, ((0, Np - N), (0, 0)))

    gamma2 = gamma.reshape(1, D).astype(jnp.float32)
    beta2 = beta.reshape(1, D).astype(jnp.float32)
    # Weight should be stored in bf16 by the caller; cast only if needed.
    w_bf = w if w.dtype == jnp.bfloat16 else w.astype(jnp.bfloat16)
    b2 = b.reshape(1, D).astype(jnp.float32)

    x_itemsize = jnp.dtype(x_compute_dtype).itemsize
    # vmem_need already counts double buffers; add modest headroom, cap at chip budget.
    vmem_limit = int(min(max(int(vmem_need * 1.25), 16 * 1024 * 1024), budget))

    # W is read once if VMEM-resident (tn == D), otherwise once per row tile.
    w_hbm_reads = 1 if tn == D else n_row_tiles
    cost = pl.CostEstimate(
        flops=2 * N * D * D + 10 * N * D,
        transcendentals=N,                               # one rsqrt per row
        bytes_accessed=(N * D * x_itemsize               # x read
                        + N * D * out_itemsize           # out writeback
                        + w_hbm_reads * D * D * 2        # W read(s), bf16
                        + 3 * D * 4),                    # gamma / beta / bias
    )

    out = pl.pallas_call(
        prenorm_linear_kernel,
        out_shape=jax.ShapeDtypeStruct((Np, D), out_dtype),
        grid_spec=pltpu.PrefetchScalarGridSpec(
            num_scalar_prefetch=0,
            grid=(n_row_tiles, n_col_tiles),
            in_specs=[
                pl.BlockSpec((tm, D), lambda i, j: (i, 0)),   # x rows (reused over j)
                pl.BlockSpec((1, D), lambda i, j: (0, 0)),    # gamma (resident)
                pl.BlockSpec((1, D), lambda i, j: (0, 0)),    # beta  (resident)
                pl.BlockSpec((D, tn), lambda i, j: (0, j)),   # W (resident when tn==D)
                pl.BlockSpec((1, tn), lambda i, j: (0, j)),   # bias column tile
            ],
            out_specs=pl.BlockSpec((tm, tn), lambda i, j: (i, j)),
            scratch_shapes=[pltpu.VMEM((tm, D), jnp.bfloat16)],   # cached LN output
        ),
        compiler_params=pltpu.CompilerParams(
            # Column axis must stay "arbitrary": y scratch is written only at j == 0.
            dimension_semantics=("parallel", "arbitrary"),
            vmem_limit_bytes=vmem_limit,
        ),
        cost_estimate=cost,
    )(x2, gamma2, beta2, w_bf, b2)

    return out[:N].reshape(B, S, D)


if __name__ == "__main__":
    # Small but lane-dense shapes (D multiple of 128).
    B, S, D = 2, 8, 128
    key = jax.random.PRNGKey(0)
    kx, kw, kb = jax.random.split(key, 3)

    x = jax.random.normal(kx, (B, S, D), dtype=jnp.float32)

    # PreNorm.__init__: nn.LayerNorm(dim) -> gamma=1, beta=0 (deterministic)
    gamma = jnp.ones((D,), dtype=jnp.float32)
    beta = jnp.zeros((D,), dtype=jnp.float32)

    # fn = Linear(dim, dim), deterministic synthetic weights (stored as (in, out)),
    # pre-cast to bf16 once (outside the per-call path).
    w = jax.random.normal(kw, (D, D), dtype=jnp.float32) * 0.05
    b = jax.random.normal(kb, (D,), dtype=jnp.float32) * 0.01
    w_bf16 = w.astype(jnp.bfloat16)

    out = prenorm_forward(x, gamma, beta, w_bf16, b)
    jax.block_until_ready(out)

    # Reference matching the kernel's dtype path (bf16 x / LN-out / W, f32 accumulate).
    x_q = x.astype(jnp.bfloat16).astype(jnp.float32)
    mean = jnp.mean(x_q, axis=-1, keepdims=True)
    var = jnp.mean((x_q - mean) ** 2, axis=-1, keepdims=True)
    y = ((x_q - mean) * jax.lax.rsqrt(var + EPS)) * gamma + beta
    y_bf = y.astype(jnp.bfloat16).astype(jnp.float32)
    ref = jnp.dot(y_bf, w_bf16.astype(jnp.float32),
                  precision=jax.lax.Precision.HIGHEST) + b
    assert jnp.allclose(out, ref, atol=2e-2, rtol=2e-2), "mismatch vs reference"

    print("KERNEL_OK")
</pallas_src>

<mosaic_0001>
module attributes {stable_mosaic.version = 11 : i64} {
  func.func @prenorm_linear_kernel(%arg0: i32, %arg1: i32, %arg2: memref<16x128xbf16, #tpu.memory_space<vmem>>, %arg3: memref<1x128xf32, #tpu.memory_space<vmem>>, %arg4: memref<1x128xf32, #tpu.memory_space<vmem>>, %arg5: memref<128x128xbf16, #tpu.memory_space<vmem>>, %arg6: memref<1x128xf32, #tpu.memory_space<vmem>>, %arg7: memref<16x128xf32, #tpu.memory_space<vmem>>, %arg8: memref<16x128xbf16, #tpu.memory_space<vmem>>) attributes {dimension_semantics = [#tpu.dimension_semantics<parallel>, #tpu.dimension_semantics<arbitrary>], iteration_bounds = array<i64: 1, 1>, scalar_prefetch = 0 : i64, scratch_operands = 1 : i64, tpu.core_type = #tpu.core_type<tc>, window_params = [{transform_indices = @transform_0, window_bounds = array<i64: 16, 128>}, {pipeline_mode = #tpu.pipeline_mode<synchronous>, transform_indices = @transform_1, window_bounds = array<i64: 1, 128>}, {pipeline_mode = #tpu.pipeline_mode<synchronous>, transform_indices = @transform_2, window_bounds = array<i64: 1, 128>}, {transform_indices = @transform_3, window_bounds = array<i64: 128, 128>}, {transform_indices = @transform_4, window_bounds = array<i64: 1, 128>}, {transform_indices = @transform_5, window_bounds = array<i64: 16, 128>}]} {
    %c0_i32 = arith.constant 0 : i32
    %0 = arith.cmpi eq, %arg1, %c0_i32 : i32
    %1 = arith.extui %0 : i1 to i32
    %c0_i32_0 = arith.constant 0 : i32
    %2 = arith.cmpi ne, %1, %c0_i32_0 : i32
    scf.if %2 {
      %c0_8 = arith.constant 0 : index
      %c0_9 = arith.constant 0 : index
      %10 = vector.load %arg2[%c0_8, %c0_9] : memref<16x128xbf16, #tpu.memory_space<vmem>>, vector<16x128xbf16>
      %11 = arith.extf %10 : vector<16x128xbf16> to vector<16x128xf32>
      %cst_10 = arith.constant dense<0.000000e+00> : vector<16xf32>
      %12 = vector.multi_reduction <add>, %11, %cst_10 [1] : vector<16x128xf32> to vector<16xf32>
      %13 = vector.shape_cast %12 : vector<16xf32> to vector<16x1xf32>
      %cst_11 = arith.constant 7.812500e-03 : f32
      %14 = vector.broadcast %cst_11 : f32 to vector<16x1xf32>
      %15 = arith.mulf %13, %14 : vector<16x1xf32>
      %16 = arith.mulf %11, %11 : vector<16x128xf32>
      %cst_12 = arith.constant dense<0.000000e+00> : vector<16xf32>
      %17 = vector.multi_reduction <add>, %16, %cst_12 [1] : vector<16x128xf32> to vector<16xf32>
      %18 = vector.shape_cast %17 : vector<16xf32> to vector<16x1xf32>
      %cst_13 = arith.constant 7.812500e-03 : f32
      %19 = vector.broadcast %cst_13 : f32 to vector<16x1xf32>
      %20 = arith.mulf %18, %19 : vector<16x1xf32>
      %21 = arith.mulf %15, %15 : vector<16x1xf32>
      %22 = arith.subf %20, %21 : vector<16x1xf32>
      %23 = vector.broadcast %15 : vector<16x1xf32> to vector<16x128xf32>
      %24 = arith.subf %11, %23 : vector<16x128xf32>
      %cst_14 = arith.constant 9.99999974E-6 : f32
      %25 = vector.broadcast %cst_14 : f32 to vector<16x1xf32>
      %26 = arith.addf %22, %25 : vector<16x1xf32>
      %27 = math.rsqrt %26 : vector<16x1xf32>
      %28 = vector.broadcast %27 : vector<16x1xf32> to vector<16x128xf32>
      %29 = arith.mulf %24, %28 : vector<16x128xf32>
      %c0_15 = arith.constant 0 : index
      %c0_16 = arith.constant 0 : index
      %30 = vector.load %arg3[%c0_15, %c0_16] : memref<1x128xf32, #tpu.memory_space<vmem>>, vector<1x128xf32>
      %31 = vector.broadcast %30 : vector<1x128xf32> to vector<16x128xf32>
      %32 = arith.mulf %29, %31 : vector<16x128xf32>
      %c0_17 = arith.constant 0 : index
      %c0_18 = arith.constant 0 : index
      %33 = vector.load %arg4[%c0_17, %c0_18] : memref<1x128xf32, #tpu.memory_space<vmem>>, vector<1x128xf32>
      %34 = vector.broadcast %33 : vector<1x128xf32> to vector<16x128xf32>
      %35 = arith.addf %32, %34 : vector<16x128xf32>
      %36 = arith.truncf %35 : vector<16x128xf32> to vector<16x128xbf16>
      %c0_19 = arith.constant 0 : index
      %c0_20 = arith.constant 0 : index
      %37 = vector.load %arg8[%c0_19, %c0_20] : memref<16x128xbf16, #tpu.memory_space<vmem>>, vector<16x128xbf16>
      tpu.vector_store %arg8[%c0_19, %c0_20], %36 {strides = array<i32>} : memref<16x128xbf16, #tpu.memory_space<vmem>>, vector<16x128xbf16>,
    } else {
    }
    %c0 = arith.constant 0 : index
    %c0_1 = arith.constant 0 : index
    %3 = vector.load %arg8[%c0, %c0_1] : memref<16x128xbf16, #tpu.memory_space<vmem>>, vector<16x128xbf16>
    %c0_2 = arith.constant 0 : index
    %c0_3 = arith.constant 0 : index
    %4 = vector.load %arg5[%c0_2, %c0_3] : memref<128x128xbf16, #tpu.memory_space<vmem>>, vector<128x128xbf16>
    %cst = arith.constant dense<0.000000e+00> : vector<16x128xf32>
    %5 = tpu.matmul %3, %4, %cst {dimension_numbers = #tpu.dot_dimension_numbers<[1], [0], [0], [1], [0, 0, 1, 1], [], []>} : vector<16x128xbf16>, vector<128x128xbf16>, vector<16x128xf32> -> vector<16x128xf32>
    %c0_4 = arith.constant 0 : index
    %c0_5 = arith.constant 0 : index
    %6 = vector.load %arg6[%c0_4, %c0_5] : memref<1x128xf32, #tpu.memory_space<vmem>>, vector<1x128xf32>
    %7 = vector.broadcast %6 : vector<1x128xf32> to vector<16x128xf32>
    %8 = arith.addf %5, %7 : vector<16x128xf32>
    %c0_6 = arith.constant 0 : index
    %c0_7 = arith.constant 0 : index
    %9 = vector.load %arg7[%c0_6, %c0_7] : memref<16x128xf32, #tpu.memory_space<vmem>>, vector<16x128xf32>
    tpu.vector_store %arg7[%c0_6, %c0_7], %8 {strides = array<i32>} : memref<16x128xf32, #tpu.memory_space<vmem>>, vector<16x128xf32>,
    return
  }
  func.func @transform_0(%arg0: i32, %arg1: i32) -> (i32, i32) {
    %c0_i32 = arith.constant 0 : i32
    %c0_i32_0 = arith.constant 0 : i32
    return %arg0, %c0_i32 : i32, i32
  }
  func.func @transform_1(%arg0: i32, %arg1: i32) -> (i32, i32) {
    %c0_i32 = arith.constant 0 : i32
    %c0_i32_0 = arith.constant 0 : i32
    %c0_i32_1 = arith.constant 0 : i32
    return %c0_i32, %c0_i32_0 : i32, i32
  }
  func.func @transform_2(%arg0: i32, %arg1: i32) -> (i32, i32) {
    %c0_i32 = arith.constant 0 : i32
    %c0_i32_0 = arith.constant 0 : i32
    %c0_i32_1 = arith.constant 0 : i32
    return %c0_i32, %c0_i32_0 : i32, i32
  }
  func.func @transform_3(%arg0: i32, %arg1: i32) -> (i32, i32) {
    %c0_i32 = arith.constant 0 : i32
    %c0_i32_0 = arith.constant 0 : i32
    return %c0_i32, %arg1 : i32, i32
  }
  func.func @transform_4(%arg0: i32, %arg1: i32) -> (i32, i32) {
    %c0_i32 = arith.constant 0 : i32
    %c0_i32_0 = arith.constant 0 : i32
    return %c0_i32, %arg1 : i32, i32
  }
  func.func @transform_5(%arg0: i32, %arg1: i32) -> (i32, i32) {
    %c0_i32 = arith.constant 0 : i32
    return %arg0, %arg1 : i32, i32
  }
}

</mosaic_0001>

<bundles_post_ra>
// kernel: tpu_custom_call.1
= control target key start
LH: loop header
LB: loop body
LE: loop exit
PB: predicated region body
PF: predicated region fallthrough
CT: control target
= control target key end

     0   :  { %10 = vsyncpa [#allocation4], 0  ;;  %s458_s0 = inlined_call_operand.hbm [shape: bf16[16,128], index: 0, kind: input, shape index: {}]   ;;  %s459_s1 = inlined_call_operand.vmem [shape: f32[1,128], index: 1, kind: input, shape index: {}]   ;;  %s460_s2 = inlined_call_operand.vmem [shape: f32[1,128], index: 2, kind: input, shape index: {}]   ;;  %s461_s3 = inlined_call_operand.hbm [shape: bf16[128,128], index: 3, kind: input, shape index: {}]   ;;  %s462_s4 = inlined_call_operand.vmem [shape: f32[1,128], index: 4, kind: input, shape index: {}]   ;;  %s463_s5 = inlined_call_operand.hbm [shape: f32[16,128], index: 5, kind: output, shape index: {}]  }
   0x1   :  { %11 = vsyncpa [#allocation7], 0 }
   0x2   :  { %12 = vsyncpa [#allocation5], 0  ;;  %s374_s18 = smov [#allocation3]   ;;  %s302_s22 = scalar_lea.hbm %s458_s0, 128 }
   0x3   :  { %s18_s19 = sshll.u32 %s374_s18, 4  ;;  %p303_p0 = scmp.ne.s32.totalorder %s458_s0, %s302_s22  ;;  %s19_s19 = int_to_ptr.vmem [resolvable:$true] %s18_s19 }
   0x4   :  { %p306_p1 = scmp.lt.u32.totalorder %s302_s22, %s458_s0 }
   0x6   :  { %p308_p2 = pnand %p306_p1, %p303_p0 }
   0x8   :  { %311 = shalt.err (!%p308_p2)
}
   0x9   :  { %s312_s27 = scalar_lea.vmem %s19_s19, 128  ;;  %p317_p4 = scmp.lt.s32.totalorder %s19_s19, %s19_s19 }
   0xa   :  { %p313_p3 = scmp.ne.s32.totalorder %s19_s19, %s312_s27  ;;  %p318_p5 = scmp.lt.s32.totalorder %s312_s27, %s312_s27 }
   0xc   :  { %p319_p6 = por %p318_p5, %p317_p4 }
   0xe   :  { %p320_p7 = pnand %p319_p6, %p313_p3 }
  0x10   :  { %323 = shalt.err (!%p320_p7)
}
  0x11   :  { %s375_s28 = smov 64   ;;  %s376_s29 = smov 4  }
  0x12   :  { %24 = dma.hbm_to_vmem [thread:$0]  %s458_s0, 128, %s19_s19, [#allocation4], %s375_s28, %s375_s28, %s376_s29  }
  0x13   :  { %s377_s7 = smov [#allocation6]   ;;  %s324_s11 = scalar_lea.hbm %s461_s3, 1024 }
  0x14   :  { %s34_s8 = sshll.u32 %s377_s7, 4  ;;  %p325_p8 = scmp.ne.s32.totalorder %s461_s3, %s324_s11  ;;  %s35_s8 = int_to_ptr.vmem [resolvable:$true] %s34_s8 }
  0x15   :  { %p328_p9 = scmp.lt.u32.totalorder %s324_s11, %s461_s3 }
  0x17   :  { %p330_p10 = pnand %p328_p9, %p325_p8 }
  0x19   :  { %333 = shalt.err (!%p330_p10)
}
  0x1a   :  { %s334_s16 = scalar_lea.vmem %s35_s8, 1024  ;;  %p339_p12 = scmp.lt.s32.totalorder %s35_s8, %s35_s8 }
  0x1b   :  { %p335_p11 = scmp.ne.s32.totalorder %s35_s8, %s334_s16  ;;  %p340_p13 = scmp.lt.s32.totalorder %s334_s16, %s334_s16 }
  0x1d   :  { %p341_p0 = por %p340_p13, %p339_p12 }
  0x1f   :  { %p342_p1 = pnand %p341_p0, %p335_p11 }
  0x21   :  { %345 = shalt.err (!%p342_p1)
}
  0x22   :  { %40 = dma.hbm_to_vmem [thread:$0]  %s461_s3, 1024, %s35_s8, [#allocation7], %s375_s28, %s375_s28, %s376_s29  }
  0x23   :  { %368 = dma.done.wait [#allocation4], 128  }
  0x24   :  { %369 = vsyncadd [#allocation4], 4294967168 }
  0x25   :  { %370 = dma.done.wait [#allocation7], 1024  }
  0x26   :  { %371 = vsyncadd [#allocation7], 4294966272  ;;  %v378_v0 = vmov 0.0   ;;  %v249_v1 = vld [vmem:[#allocation3] sm:$0xff]   ;;  %v290_v6 = vld [vmem:[#allocation6] sm:$0xff]   ;;  %vm379_vm0 = vmmov 0  }
  0x27   :  { %261 = vmatprep.subr.bf16.mxu0 %v378_v0  ;;  %v250_v2 = vunpack.c.l.bf16 %v249_v1  ;;  %v251_v3 = vunpack.c.h.bf16 %v249_v1  ;;  %v291_v7 = vld [vmem:[#allocation6 + $0x8] sm:$0xff]   ;;  %v292_v8 = vld [vmem:[#allocation6 + $0x10] sm:$0xff]   ;;  %v293_v9 = vld [vmem:[#allocation6 + $0x18] sm:$0xff]   ;;  %277 = vmatprep.mubr.msk.bf16.mxu0 %vm379_vm0, %v378_v0  ;;  %s380_s23 = smov [#allocation8]  }
  0x28   :  { %262 = vmatpush3.bf16.msra.mxu0 %v290_v6  ;;  %v294_v10 = vld [vmem:[#allocation6 + $0x20] sm:$0xff]   ;;  %v295_v11 = vld [vmem:[#allocation6 + $0x28] sm:$0xff]   ;;  %v296_v12 = vld [vmem:[#allocation6 + $0x30] sm:$0xff]   ;;  %s224_s24 = sshll.u32 %s380_s23, 4  ;;  %s225_s24 = int_to_ptr.vmem [resolvable:$true] %s224_s24 }
  0x29   :  { %58 = vadd.xlane.f32.xlu0 %v250_v2  ;;  %v64_v4 = vmul.f32 %v250_v2, %v250_v2  ;;  %v65_v5 = vmul.f32 %v251_v3, %v251_v3  ;;  %263 = vmatprep.subr.bf16.mxu0 %v378_v0  ;;  %v297_v13 = vld [vmem:[#allocation6 + $0x38] sm:$0xff]   ;;  %p351_p3 = scmp.lt.s32.totalorder %s225_s24, %s225_s24 }
  0x2a   :  { %v237_v31 = vld [vmem:[%s459_s1] ss:$0 sm:$0xff]  ;;  %s346_s1 = scalar_lea.vmem %s225_s24, 256 }
  0x2b   :  { %66 = vadd.xlane.f32.xlu1 %v64_v4  ;;  %v238_v36 = vld [vmem:[%s460_s2] ss:$0 sm:$0xff]  ;;  %p347_p2 = scmp.ne.s32.totalorder %s225_s24, %s346_s1  ;;  %p352_p4 = scmp.lt.s32.totalorder %s346_s1, %s346_s1 }
  0x2c   :  { %264 = vmatpush3.bf16.msra.mxu0 %v291_v7  ;;  %v239_v41 = vld [vmem:[%s462_s4] ss:$0 sm:$0xff] }
  0x2d   :  { %60 = vadd.xlane.f32.xlu0 %v251_v3  ;;  %265 = vmatprep.subr.bf16.mxu0 %v378_v0  ;;  %p353_p5 = por %p352_p4, %p351_p3 }
  0x2f   :  { %68 = vadd.xlane.f32.xlu1 %v65_v5  ;;  %p354_p6 = pnand %p353_p5, %p347_p2 }
  0x30   :  { %266 = vmatpush3.bf16.msra.mxu0 %v292_v8 }
  0x31   :  { %267 = vmatprep.subr.bf16.mxu0 %v378_v0 }
  0x34   :  { %268 = vmatpush3.bf16.msra.mxu0 %v293_v9 }
  0x35   :  { %269 = vmatprep.subr.bf16.mxu0 %v378_v0 }
  0x38   :  { %270 = vmatpush3.bf16.msra.mxu0 %v294_v10 }
  0x39   :  { %271 = vmatprep.subr.bf16.mxu0 %v378_v0 }
  0x3c   :  { %272 = vmatpush3.bf16.msra.mxu0 %v295_v11 }
  0x3d   :  { %273 = vmatprep.subr.bf16.mxu0 %v378_v0 }
  0x40   :  { %274 = vmatpush3.bf16.msra.mxu0 %v296_v12 }
  0x41   :  { %275 = vmatprep.subr.bf16.mxu0 %v378_v0 }
  0x44   :  { %276 = vmatpush3.bf16.msra.mxu0 %v297_v13 }
  0xb6   :  { %v59_v14 = vpop.xlane.xlu0 %58 }
  0xb7   :  { %v62_v15 = vmul.f32 0.0078125, %v59_v14 }
  0xb8   :  { %v67_v16 = vpop.xlane.xlu1 %66 }
  0xb9   :  { %v72_v17 = vmul.f32 %v62_v15, %v62_v15  ;;  %v70_v18 = vmul.f32 0.0078125, %v67_v16  ;;  %v76_v28 = vsub.f32 %v250_v2, %v62_v15 }
  0xba   :  { %v61_v19 = vpop.xlane.xlu0 %60 }
  0xbb   :  { %v74_v20 = vsub.f32 %v70_v18, %v72_v17  ;;  %v63_v21 = vmul.f32 0.0078125, %v61_v19 }
  0xbc   :  { %v69_v22 = vpop.xlane.xlu1 %68 }
  0xbd   :  { %v78_v23 = vadd.f32 1e-05, %v74_v20  ;;  %v73_v24 = vmul.f32 %v63_v21, %v63_v21  ;;  %v71_v25 = vmul.f32 0.0078125, %v69_v22  ;;  %v77_v32 = vsub.f32 %v251_v3, %v63_v21 }
  0xbf   :  { %298 = vrsqrt.f32 %v78_v23  ;;  %v75_v26 = vsub.f32 %v71_v25, %v73_v24 }
  0xc1   :  { %v79_v27 = vadd.f32 1e-05, %v75_v26 }
  0xc3   :  { %300 = vrsqrt.f32 %v79_v27 }
  0xc9   :  { %v299_v29 = vpop.eup %298 }
  0xca   :  { %v82_v30 = vmul.f32 %v299_v29, %v76_v28 }
  0xcc   :  { %v91_v35 = vmul.f32 %v237_v31, %v82_v30 }
  0xcd   :  { %v301_v33 = vpop.eup %300 }
  0xce   :  { %v83_v34 = vmul.f32 %v301_v33, %v77_v32  ;;  %v100_v38 = vadd.f32 %v238_v36, %v91_v35 }
  0xd0   :  { %v92_v37 = vmul.f32 %v237_v31, %v83_v34 }
  0xd2   :  { %v101_v39 = vadd.f32 %v238_v36, %v92_v37 }
  0xd4   :  { %v102_v40 = vpack.c.bf16 %v101_v39, %v100_v38 }
  0xd6   :  { %278 = vmatmul.mubr.bf16.vlgmr.msra.gmra.mrb[0].mxu0 %v102_v40 }
 0x1a9   :  { %v210_v42 = vpop.f32.mrb[0].mxu0 }
 0x1aa   :  { %v211_v43 = vadd.f32 %v239_v41, %v210_v42  ;;  %v279_v44 = vpop.f32.mrb[1].mxu0 }
 0x1ab   :  { %v213_v45 = vpop.f32.mrb[2].mxu0 }
 0x1ac   :  { %217 = vst [vmem:[#allocation8] sm:$0xff] %v211_v43  ;;  %v214_v46 = vadd.f32 %v239_v41, %v213_v45  ;;  %v280_v47 = vpop.f32.mrb[3].mxu0 }
 0x1ae   :  { %218 = vst [vmem:[#allocation8 + $0x8] sm:$0xff] %v214_v46 }
 0x1af   :  { %357 = shalt.err (!%p354_p6)
}
 0x1b0   :  { %s358_s25 = scalar_lea.hbm %s463_s5, 256 }
 0x1b1   :  { %p359_p7 = scmp.ne.s32.totalorder %s463_s5, %s358_s25  ;;  %p362_p8 = scmp.lt.u32.totalorder %s358_s25, %s463_s5 }
 0x1b3   :  { %p364_p9 = pnand %p362_p8, %p359_p7 }
 0x1b5   :  { %367 = shalt.err (!%p364_p9)
}
 0x1b6   :  { %s381_s30 = smov 128   ;;  %s382_s6 = smov 8  }
 0x1b7   :  { %230 = dma.vmem_to_hbm [thread:$0]  %s225_s24, 256, %s463_s5, [#allocation5], %s381_s30, %s381_s30, %s382_s6  }
 0x1b8   :  { %372 = dma.done.wait [#allocation5], 256  }
 0x1b9   :  { %373 = vsyncadd [#allocation5], 4294967040 }
 0x1ba   :  { %234 = vsyncpa [#allocation4], 1 }
 0x1bb   :  { %235 = vsyncpa [#allocation7], 1 }
 0x1bc   :  { %236 = vsyncpa [#allocation5], 1 }

</bundles_post_ra>
